<compile_context>
chip_gen: v6e
topology: v6e:2x2x1
jax: 0.10.0
libtpu: 0.0.40
codegen_flags: <defaults>
</compile_context>

<pallas_src>
import jax
import jax.numpy as jnp
from jax import lax
from jax.experimental import pallas as pl
from jax.experimental.pallas import tpu as pltpu


def _normlogit_kernel(x_ref, wt_ref, b_ref, o_ref):
    """out = sigmoid((x @ W^T) * rsqrt(||x||^2) + b) for one (batch, D_out) tile."""
    x = x_ref[...]                           # (bt, D_in)   native dtype -> MXU
    wt = wt_ref[...]                         # (D_in, tn)   pre-transposed, resident/streamed
    b = b_ref[...].astype(jnp.float32)       # (1, tn)

    # Per-row squared L2 norm in f32.  rsqrt(sumsq + 1e-32) ~= 1/(||x|| + 1e-16)
    # (torch semantics) to ~1e-7 relative; both yield sigmoid(b) for all-zero rows.
    xf = x.astype(jnp.float32)
    sumsq = jnp.sum(xf * xf, axis=-1, keepdims=True)         # (bt, 1)  VPU + XLU
    scale = lax.rsqrt(sumsq + 1e-32)                         # EUP

    # MXU matmul with f32 accumulation.  Row scale commutes with the contraction, so
    # we scale the (bt, tn) result instead of the (bt, D_in) input.
    # TODO(synk): for MXU-bound shapes on v6e/v7x, cast x/wt to bf16 here (keep the
    # f32 sumsq/scale) -- skipped to stay numerically close to the f32 PyTorch module.
    y = jnp.dot(x, wt, preferred_element_type=jnp.float32)   # (bt, tn)

    z = y * scale + b
    # sigmoid(z) == 0.5 * tanh(0.5 * z) + 0.5 ; tanh runs on the EUP slot.
    o_ref[...] = (0.5 * jnp.tanh(0.5 * z) + 0.5).astype(o_ref.dtype)


def prepare_norm_logit_params(weight, bias):
    """One-time (model-init) prep: pad D_out to a multiple of 128 lanes and
    pre-transpose the PyTorch-layout (D_out, D_in) weight to (D_in, D_out_pad)."""
    d_out, d_in = weight.shape
    d_out_pad = pl.cdiv(d_out, 128) * 128
    if d_out_pad != d_out:
        weight = jnp.pad(weight, ((0, d_out_pad - d_out), (0, 0)))
        bias = jnp.pad(bias, (0, d_out_pad - d_out))
    wt = jnp.transpose(weight)               # (D_in, D_out_pad): MXU consumes (K, N)
    b2d = bias.reshape(1, d_out_pad)
    return wt, b2d, d_out


def norm_logit(x, wt, b2d, d_out, *, b_tile=512, resident_w_budget=24 << 20):
    """x: (B, D_in); wt: (D_in, D_out_pad) pre-transposed; b2d: (1, D_out_pad)."""
    B, d_in = x.shape
    d_in_w, d_out_pad = wt.shape
    assert d_in == d_in_w and d_out <= d_out_pad
    out_dtype = x.dtype

    # --- Batch tile: sublane-aligned; >= 4 grid steps for large B (v7x has 2 TCs). ----
    sublane = 8 * max(1, 4 // jnp.dtype(out_dtype).itemsize)
    if B <= max(b_tile, sublane):
        bt = B                               # single block == full extent (always legal)
    else:
        target = min(b_tile, pl.cdiv(B, 4))
        if target >= 128:
            bt = (target // 128) * 128       # MXU / lane friendly M
        else:
            bt = max(sublane, (target // sublane) * sublane)
    nb = pl.cdiv(B, bt)

    # --- D_out tiling: keep W resident when it fits, else stream 128-multiple N tiles.
    w_bytes = d_in * d_out_pad * jnp.dtype(wt.dtype).itemsize
    if w_bytes <= resident_w_budget:
        tn = d_out_pad
    else:
        tn = max(128, ((8 << 20) // max(1, d_in * jnp.dtype(wt.dtype).itemsize)) // 128 * 128)
        tn = min(tn, d_out_pad)
    nn = pl.cdiv(d_out_pad, tn)
    resident = nn == 1

    if resident:
        # Constant index_map => single buffer (halves resident-W VMEM footprint).
        w_spec = pl.BlockSpec((d_in, tn), lambda i, j: (0, j), pipeline_mode=pl.Buffered(1))
        b_spec = pl.BlockSpec((1, tn), lambda i, j: (0, j), pipeline_mode=pl.Buffered(1))
        w_bufs = 1
    else:
        w_spec = pl.BlockSpec((d_in, tn), lambda i, j: (0, j))
        b_spec = pl.BlockSpec((1, tn), lambda i, j: (0, j))
        w_bufs = 2

    # --- Explicit scoped-VMEM budget (16/32 MiB defaults are too small for big tiles).
    x_tile = bt * d_in * jnp.dtype(x.dtype).itemsize
    w_tile = d_in * tn * jnp.dtype(wt.dtype).itemsize
    bias_tile = tn * jnp.dtype(b2d.dtype).itemsize
    out_tile = bt * tn * jnp.dtype(out_dtype).itemsize
    f32_tmp = bt * (d_in + 2 * tn + 8) * 4            # xf, y/z and staging in f32
    need = 2 * x_tile + w_bufs * (w_tile + bias_tile) + 2 * out_tile + f32_tmp + (2 << 20)
    vmem_limit = int(min(max(need, 16 << 20), 64 << 20))   # 64 MiB fits every generation

    return pl.pallas_call(
        _normlogit_kernel,
        out_shape=jax.ShapeDtypeStruct((B, d_out), out_dtype),  # unpadded: masked stores
        grid=(nb, nn),                                          # N innermost; x tile reused
        in_specs=[
            pl.BlockSpec((bt, d_in), lambda i, j: (i, 0)),      # x: streamed over batch
            w_spec,                                             # W^T: resident or N-streamed
            b_spec,                                             # bias
        ],
        out_specs=pl.BlockSpec((bt, tn), lambda i, j: (i, j)),
        compiler_params=pltpu.CompilerParams(
            dimension_semantics=("parallel", "parallel"),
            vmem_limit_bytes=vmem_limit,
        ),
    )(x, wt, b2d)


if __name__ == "__main__":
    def reference(x, weight, bias):
        norm = jnp.linalg.norm(x, axis=-1, keepdims=True) + 1e-16
        return jax.nn.sigmoid((x / norm) @ weight.T + bias)

    key = jax.random.PRNGKey(0)

    # Case 1: shapes matching the module's intent (batch x input_dim) -> output_dim.
    B, input_dim, hidden_dim, output_dim = 8, 32, 64, 16   # hidden_dim unused by NormLogit
    k1, k2, k3, key = jax.random.split(key, 4)
    x = jax.random.normal(k1, (B, input_dim), dtype=jnp.float32)
    bound = 1.0 / jnp.sqrt(jnp.float32(input_dim))
    weight = jax.random.uniform(k2, (output_dim, input_dim), jnp.float32, -bound, bound)
    bias = jax.random.uniform(k3, (output_dim,), jnp.float32, -bound, bound)

    wt, b2d, d_out = prepare_norm_logit_params(weight, bias)   # one-time "init" prep
    out = norm_logit(x, wt, b2d, d_out)
    jax.block_until_ready(out)
    ref = reference(x, weight, bias)
    assert out.shape == ref.shape
    assert jnp.allclose(out, ref, atol=1e-5, rtol=1e-5)

    # Case 2: ragged batch / tiny D_out exercising the partial-block masking paths.
    B2, d_in2, d_out2 = 37, 20, 5
    k1, k2, k3, key = jax.random.split(key, 4)
    x2 = jax.random.normal(k1, (B2, d_in2), dtype=jnp.float32)
    bound2 = 1.0 / jnp.sqrt(jnp.float32(d_in2))
    w2 = jax.random.uniform(k2, (d_out2, d_in2), jnp.float32, -bound2, bound2)
    bb2 = jax.random.uniform(k3, (d_out2,), jnp.float32, -bound2, bound2)

    wt2, b2d2, do2 = prepare_norm_logit_params(w2, bb2)
    out2 = norm_logit(x2, wt2, b2d2, do2, b_tile=16)           # forces a multi-step grid
    jax.block_until_ready(out2)
    ref2 = reference(x2, w2, bb2)
    assert out2.shape == ref2.shape
    assert jnp.allclose(out2, ref2, atol=1e-5, rtol=1e-5)

    print("KERNEL_OK")
</pallas_src>

<mosaic_0001>
module attributes {stable_mosaic.version = 11 : i64} {
  func.func @_normlogit_kernel(%arg0: i32, %arg1: i32, %arg2: memref<8x32xf32, #tpu.memory_space<vmem>>, %arg3: memref<32x128xf32, #tpu.memory_space<vmem>>, %arg4: memref<1x128xf32, #tpu.memory_space<vmem>>, %arg5: memref<8x128xf32, #tpu.memory_space<vmem>>) attributes {dimension_semantics = [#tpu.dimension_semantics<parallel>, #tpu.dimension_semantics<parallel>], iteration_bounds = array<i64: 1, 1>, scalar_prefetch = 0 : i64, scratch_operands = 0 : i64, tpu.core_type = #tpu.core_type<tc>, window_params = [{transform_indices = @transform_0, window_bounds = array<i64: 8, 32>}, {pipeline_mode = #tpu.pipeline_mode<synchronous>, transform_indices = @transform_1, window_bounds = array<i64: 32, 128>}, {pipeline_mode = #tpu.pipeline_mode<synchronous>, transform_indices = @transform_2, window_bounds = array<i64: 1, 128>}, {transform_indices = @transform_3, window_bounds = array<i64: 8, 128>}]} {
    %c0 = arith.constant 0 : index
    %c0_0 = arith.constant 0 : index
    %0 = vector.load %arg2[%c0, %c0_0] : memref<8x32xf32, #tpu.memory_space<vmem>>, vector<8x32xf32>
    %c0_1 = arith.constant 0 : index
    %c0_2 = arith.constant 0 : index
    %1 = vector.load %arg3[%c0_1, %c0_2] : memref<32x128xf32, #tpu.memory_space<vmem>>, vector<32x128xf32>
    %c0_3 = arith.constant 0 : index
    %c0_4 = arith.constant 0 : index
    %2 = vector.load %arg4[%c0_3, %c0_4] : memref<1x128xf32, #tpu.memory_space<vmem>>, vector<1x128xf32>
    %3 = arith.mulf %0, %0 : vector<8x32xf32>
    %cst = arith.constant dense<0.000000e+00> : vector<8xf32>
    %4 = vector.multi_reduction <add>, %3, %cst [1] : vector<8x32xf32> to vector<8xf32>
    %5 = vector.shape_cast %4 : vector<8xf32> to vector<8x1xf32>
    %cst_5 = arith.constant 1.000000e-32 : f32
    %6 = vector.broadcast %cst_5 : f32 to vector<8x1xf32>
    %7 = arith.addf %5, %6 : vector<8x1xf32>
    %8 = math.rsqrt %7 : vector<8x1xf32>
    %cst_6 = arith.constant dense<0.000000e+00> : vector<8x128xf32>
    %9 = tpu.matmul %0, %1, %cst_6 {dimension_numbers = #tpu.dot_dimension_numbers<[1], [0], [0], [1], [0, 0, 1, 1], [], []>} : vector<8x32xf32>, vector<32x128xf32>, vector<8x128xf32> -> vector<8x128xf32>
    %10 = vector.broadcast %8 : vector<8x1xf32> to vector<8x128xf32>
    %11 = arith.mulf %9, %10 : vector<8x128xf32>
    %12 = vector.broadcast %2 : vector<1x128xf32> to vector<8x128xf32>
    %13 = arith.addf %11, %12 : vector<8x128xf32>
    %cst_7 = arith.constant 5.000000e-01 : f32
    %14 = vector.broadcast %cst_7 : f32 to vector<8x128xf32>
    %15 = arith.mulf %14, %13 : vector<8x128xf32>
    %16 = math.tanh %15 : vector<8x128xf32>
    %cst_8 = arith.constant 5.000000e-01 : f32
    %17 = vector.broadcast %cst_8 : f32 to vector<8x128xf32>
    %18 = arith.mulf %17, %16 : vector<8x128xf32>
    %cst_9 = arith.constant 5.000000e-01 : f32
    %19 = vector.broadcast %cst_9 : f32 to vector<8x128xf32>
    %20 = arith.addf %18, %19 : vector<8x128xf32>
    %c0_10 = arith.constant 0 : index
    %c0_11 = arith.constant 0 : index
    %21 = vector.load %arg5[%c0_10, %c0_11] : memref<8x128xf32, #tpu.memory_space<vmem>>, vector<8x128xf32>
    tpu.vector_store %arg5[%c0_10, %c0_11], %20 {strides = array<i32>} : memref<8x128xf32, #tpu.memory_space<vmem>>, vector<8x128xf32>,
    return
  }
  func.func @transform_0(%arg0: i32, %arg1: i32) -> (i32, i32) {
    %c0_i32 = arith.constant 0 : i32
    %c0_i32_0 = arith.constant 0 : i32
    return %arg0, %c0_i32 : i32, i32
  }
  func.func @transform_1(%arg0: i32, %arg1: i32) -> (i32, i32) {
    %c0_i32 = arith.constant 0 : i32
    %c0_i32_0 = arith.constant 0 : i32
    return %c0_i32, %arg1 : i32, i32
  }
  func.func @transform_2(%arg0: i32, %arg1: i32) -> (i32, i32) {
    %c0_i32 = arith.constant 0 : i32
    %c0_i32_0 = arith.constant 0 : i32
    return %c0_i32, %arg1 : i32, i32
  }
  func.func @transform_3(%arg0: i32, %arg1: i32) -> (i32, i32) {
    %c0_i32 = arith.constant 0 : i32
    return %arg0, %arg1 : i32, i32
  }
}

</mosaic_0001>

<bundles_post_ra>
// kernel: tpu_custom_call.1
= control target key start
LH: loop header
LB: loop body
LE: loop exit
PB: predicated region body
PF: predicated region fallthrough
CT: control target
= control target key end

     0   :  { %8 = vsyncpa [#allocation3], 0  ;;  %s290_s0 = inlined_call_operand.hbm [shape: f32[8,32], index: 0, kind: input, shape index: {}]   ;;  %s291_s1 = inlined_call_operand.hbm [shape: f32[32,128], index: 1, kind: input, shape index: {}]   ;;  %s292_s2 = inlined_call_operand.vmem [shape: f32[1,128], index: 2, kind: input, shape index: {}]   ;;  %s293_s3 = inlined_call_operand.hbm [shape: f32[8,16], index: 3, kind: output, shape index: {}]  }
   0x1   :  { %9 = vsyncpa [#allocation6], 0 }
   0x2   :  { %10 = vsyncpa [#allocation4], 0  ;;  %s251_s12 = smov [#allocation2]   ;;  %s252_s14 = smov [#allocation5]  }
   0x3   :  { %s17_s13 = sshll.u32 %s251_s12, 4  ;;  %s26_s15 = sshll.u32 %s252_s14, 4  ;;  %s18_s13 = int_to_ptr.vmem [resolvable:$true] %s17_s13  ;;  %s27_s15 = int_to_ptr.vmem [resolvable:$true] %s26_s15 }
   0x4   :  { %s193_s16 = scalar_lea.vmem %s18_s13, 128  ;;  %p198_p1 = scmp.lt.s32.totalorder %s18_s13, %s18_s13 }
   0x5   :  { %p194_p0 = scmp.ne.s32.totalorder %s18_s13, %s193_s16  ;;  %p199_p2 = scmp.lt.s32.totalorder %s193_s16, %s193_s16 }
   0x7   :  { %p200_p3 = por %p199_p2, %p198_p1 }
   0x9   :  { %p201_p4 = pnand %p200_p3, %p194_p0 }
   0xb   :  { %204 = shalt.err (!%p201_p4)
}
   0xc   :  { %20 = dma.hbm_to_vmem [thread:$0]  %s290_s0, 128, %s18_s13, [#allocation3]  }
   0xd   :  { %s213_s19 = scalar_lea.vmem %s27_s15, 512  ;;  %p218_p6 = scmp.lt.s32.totalorder %s27_s15, %s27_s15 }
   0xe   :  { %p214_p5 = scmp.ne.s32.totalorder %s27_s15, %s213_s19  ;;  %p219_p7 = scmp.lt.s32.totalorder %s213_s19, %s213_s19 }
  0x10   :  { %p220_p8 = por %p219_p7, %p218_p6 }
  0x12   :  { %p221_p9 = pnand %p220_p8, %p214_p5 }
  0x14   :  { %224 = shalt.err (!%p221_p9)
}
  0x15   :  { %s253_s20 = smov 128   ;;  %s254_s21 = smov 8  }
  0x16   :  { %32 = dma.hbm_to_vmem [thread:$0]  %s291_s1, 512, %s27_s15, [#allocation6], %s253_s20, %s253_s20, %s254_s21  }
  0x17   :  { %245 = dma.done.wait [#allocation3], 128  }
  0x18   :  { %246 = vsyncadd [#allocation3], 4294967168 }
  0x19   :  { %247 = dma.done.wait [#allocation6], 512  }
  0x1a   :  { %248 = vsyncadd [#allocation6], 4294966784  ;;  %v255_v0 = vmov 0.0   ;;  %vm256_vm0 = vmmov 0   ;;  %v45_v1 = vld [vmem:[#allocation5 + $0x18] sm:$0xff]  ;;  %v44_v2 = vld [vmem:[#allocation5 + $0x10] sm:$0xff] }
  0x1b   :  { %163 = vmatprep.subr.mxu0 %v255_v0  ;;  %171 = vmatprep.mubr.msk.f32.mxu0 %vm256_vm0, %v255_v0  ;;  %v41_v3 = vld [vmem:[#allocation2] sm:$0xff]  ;;  %v43_v4 = vld [vmem:[#allocation5 + $0x8] sm:$0xff]  ;;  %vm48_vm1 = vcmask 261120   ;;  %v42_v6 = vld [vmem:[#allocation5] sm:$0xff]  ;;  %s257_s24 = smov [#allocation7]  }
  0x1c   :  { %164 = vmatpush3.msra.mxu0 %v45_v1  ;;  %v47_v5 = vmul.f32 %v41_v3, %v41_v3  ;;  %v157_v11 = vld [vmem:[%s292_s2] ss:$0 sm:$0xff]  ;;  %s146_s25 = sshll.u32 %s257_s24, 4  ;;  %s147_s25 = int_to_ptr.vmem [resolvable:$true] %s146_s25 }
  0x1d   :  { %165 = vmatprep.subr.mxu0 %v255_v0  ;;  %s225_s26 = scalar_lea.vmem %s147_s25, 128  ;;  %p230_p11 = scmp.lt.s32.totalorder %s147_s25, %s147_s25 }
  0x1e   :  { %166 = vmatpush3.msra.mxu0 %v44_v2  ;;  %v49_v7 = vsel %vm48_vm1, %v47_v5, 0.0  ;;  %p226_p10 = scmp.ne.s32.totalorder %s147_s25, %s225_s26  ;;  %p231_p12 = scmp.lt.s32.totalorder %s225_s26, %s225_s26 }
  0x1f   :  { %167 = vmatprep.subr.mxu0 %v255_v0  ;;  %50 = vadd.xlane.f32.xlu0 %v49_v7 }
  0x20   :  { %168 = vmatpush3.msra.mxu0 %v43_v4  ;;  %p232_p13 = por %p231_p12, %p230_p11 }
  0x21   :  { %169 = vmatprep.subr.mxu0 %v255_v0 }
  0x22   :  { %170 = vmatpush3.msra.mxu0 %v42_v6  ;;  %p233_p0 = pnand %p232_p13, %p226_p10 }
  0x23   :  { %172 = vmatmul.mubr.msk.f32.vlgmr.msra.gmra.mxu0 %vm48_vm1, %v41_v3 }
  0xa8   :  { %v51_v8 = vpop.xlane.xlu0 %50 }
  0xa9   :  { %v52_v9 = vadd.f32 1e-32, %v51_v8 }
  0xab   :  { %181 = vrsqrt.f32 %v52_v9 }
  0xb8   :  { %v182_v10 = vpop.eup %181 }
  0xe3   :  { %v123_v12 = vpop.f32.mrf.mxu0 }
  0xe4   :  { %v127_v13 = vmul.f32 %v182_v10, %v123_v12 }
  0xe5   :  { %v173_v14 = vpop.f32.mrf.mxu0 }
  0xe6   :  { %v134_v15 = vadd.f32 %v157_v11, %v127_v13 }
  0xe8   :  { %v135_v16 = vmul.f32 0.5, %v134_v15 }
  0xea   :  { %183 = vtanh.f32 %v135_v16 }
  0xf7   :  { %v184_v17 = vpop.eup %183 }
  0xf8   :  { %v137_v18 = vmul.f32 0.5, %v184_v17 }
  0xfa   :  { %v138_v19 = vadd.f32 0.5, %v137_v18 }
  0xfc   :  { %139 = vst [vmem:[#allocation7] sm:$0xff] %v138_v19 }
  0xfd   :  { %236 = shalt.err (!%p233_p0)
}
  0xfe   :  { %149 = dma.vmem_to_hbm [thread:$0]  %s147_s25, 128, %s293_s3, [#allocation4]  }
  0xff   :  { %249 = dma.done.wait [#allocation4], 128  }
 0x100   :  { %250 = vsyncadd [#allocation4], 4294967168 }
 0x101   :  { %153 = vsyncpa [#allocation3], 1 }
 0x102   :  { %154 = vsyncpa [#allocation6], 1 }
 0x103   :  { %155 = vsyncpa [#allocation4], 1 }

</bundles_post_ra>
